<compile_context>
chip_gen: v5e
topology: v5e:2x2
jax: 0.10.0
libtpu: 0.0.40
codegen_flags: <defaults>
</compile_context>

<pallas_src>
import functools
import math

import jax
import jax.numpy as jnp
from jax.experimental import pallas as pl
from jax.experimental.pallas import tpu as pltpu


# --------------------------------------------------------------------------- #
# Hardware-aware sizing helpers
# --------------------------------------------------------------------------- #

@functools.lru_cache(maxsize=None)
def _vmem_params():
    """Returns (input-stream VMEM budget, explicit vmem_limit_bytes) per generation."""
    cap = 64 * 1024 * 1024                       # conservative fallback (v7x per-TC VMEM)
    try:
        cap = int(pltpu.get_tpu_info().vmem_capacity_bytes)
    except Exception:
        pass
    budget = int(min(cap // 3, 28 * 1024 * 1024))   # ~21 MiB on v7x, 28 MiB on v5e/v6e
    limit = int(min(cap * 3 // 4, budget * 2))      # explicit scoped-VMEM limit w/ headroom
    return budget, limit


@functools.lru_cache(maxsize=None)
def _num_tensorcores():
    """2 on dual-TensorCore chips (v4/v5p megacore, v7x), else 1 (v5e/v6e)."""
    try:
        kind = jax.devices()[0].device_kind.lower()
    except Exception:
        return 1
    # TODO(synk): query a core-count field from pltpu.get_tpu_info() when available and
    # confirm "parallel" really shards the leading axis across v7x's two TensorCores
    # (otherwise switch to pltpu.CORE_PARALLEL / pl.core_map).
    return 2 if any(tag in kind for tag in ("v4", "v5p", "v7")) else 1


# --------------------------------------------------------------------------- #
# Kernel
# --------------------------------------------------------------------------- #

def _masked_sq_kernel(yhat_ref, y_ref, mask_ref, sq_ref, cnt_ref, *,
                      total_rows, need_row_mask):
    """Accumulate per-(column, sublane) sums of mask*(y_hat-y)^2 and of mask.

    Grid = (n_par, inner): outer axis partitions row blocks across TensorCores
    ("parallel"), inner axis streams row tiles ("arbitrary" reduction).
    The running sums accumulate directly into the (8, cols) f32 output blocks.
    """
    p = pl.program_id(0)
    i = pl.program_id(1)
    tile_rows, cols = yhat_ref.shape

    @pl.when(i == 0)
    def _init():
        sq_ref[...] = jnp.zeros_like(sq_ref)
        cnt_ref[...] = jnp.zeros_like(cnt_ref)

    # Stream native dtype (bf16/f32 data, 1-byte bool mask); up-cast in-register.
    yh = yhat_ref[...].astype(jnp.float32)
    yt = y_ref[...].astype(jnp.float32)
    mraw = mask_ref[...]
    if mraw.dtype == jnp.bool_:
        m = jnp.where(mraw, jnp.float32(1), jnp.float32(0))
    else:
        m = mraw.astype(jnp.float32)       # soft / weighted masks pass through as-is
    diff = yh - yt
    sq = m * diff * diff

    groups = tile_rows // 8

    def _accumulate(sq_v, m_v):
        # Sublane-fold: (tile_rows, cols) -> (groups, 8, cols) -> sum over groups.
        # Same VPU add count as a full-tile accumulator, but partial sums stay in an
        # (8, cols) block (one vreg row of f32) instead of full-tile VMEM round-trips.
        sq_ref[...] += jnp.sum(sq_v.reshape(groups, 8, cols), axis=0)
        cnt_ref[...] += jnp.sum(m_v.reshape(groups, 8, cols), axis=0)

    if need_row_mask:
        # Compiled in only when the grid over-covers the packed row range; at runtime
        # only the boundary / clamped-OOB blocks take the masked path.
        inner = pl.num_programs(1)
        base = (p * inner + i) * tile_rows
        is_edge = base + tile_rows > total_rows   # partial edge block OR clamped OOB block

        @pl.when(is_edge)
        def _edge():
            row = jax.lax.broadcasted_iota(jnp.int32, (tile_rows, cols), 0) + base
            valid = row < total_rows
            _accumulate(jnp.where(valid, sq, 0.0), jnp.where(valid, m, 0.0))

        @pl.when(jnp.logical_not(is_edge))
        def _interior():
            _accumulate(sq, m)
    else:
        _accumulate(sq, m)


# --------------------------------------------------------------------------- #
# Wrapper
# --------------------------------------------------------------------------- #

def _pack_factor(n_feat: int) -> int:
    """Smallest k such that (k * n_feat) % 128 == 0 (full vreg lanes per packed row)."""
    return 128 // math.gcd(n_feat, 128)


def _choose_tile_rows(rows, cols, stream_bytes, max_tile_rows, vmem_budget_bytes):
    """Rows per tile given the per-generation VMEM budget.

    Per packed row we count the double-buffered native-dtype input streams plus ~4
    f32-sized compiler temporaries for the elementwise chain (convert/diff/square/mask),
    so the whole pipeline footprint stays inside the explicit vmem_limit.
    """
    per_row = cols * (2 * stream_bytes + 4 * 4)
    t = vmem_budget_bytes // max(per_row, 1)
    t = min(t, max_tile_rows)
    rows_aligned = ((rows + 31) // 32) * 32
    t = min(t, rows_aligned)
    t = max((t // 32) * 32, 32)   # multiple of 32 covers f32/bf16/int8/bool sublane tiling
    return int(t)


def _evolutive_masked_mse_impl(y_hat, y, mask, epoch_ratio, max_tile_rows):
    n, f = y_hat.shape
    assert y.shape == (n, f) and mask.shape == (n, f)

    # Lane-dense repack: (N, F) -> (N/k, k*F) with k*F a multiple of 128.  The reshape
    # is a free row-major bitcast; the reduction is row-order invariant, so this is
    # pure layout plumbing.  The bool mask is streamed as-is (1 byte/elem) — no
    # wrapper-side astype copy.
    k = _pack_factor(f)
    pad_rows = (-n) % k
    if pad_rows:
        # TODO(synk): this pad materializes one extra copy of the inputs; prefer batch
        # sizes with N % k == 0 (zero-copy path).  Padded rows carry mask=0 so they
        # contribute nothing to either sum.
        cfg = ((0, pad_rows), (0, 0))
        y_hat = jnp.pad(y_hat, cfg)
        y = jnp.pad(y, cfg)
        mask = jnp.pad(mask, cfg)
    rows, cols = (n + pad_rows) // k, k * f
    yh2 = y_hat.reshape(rows, cols)
    yt2 = y.reshape(rows, cols)
    mk2 = mask.reshape(rows, cols)

    vmem_budget, vmem_limit = _vmem_params()
    stream_bytes = y_hat.dtype.itemsize + y.dtype.itemsize + mk2.dtype.itemsize
    tile_rows = _choose_tile_rows(rows, cols, stream_bytes, max_tile_rows, vmem_budget)

    n_blocks = pl.cdiv(rows, tile_rows)
    n_par = 2 if (_num_tensorcores() >= 2 and n_blocks >= 2) else 1
    inner = pl.cdiv(n_blocks, n_par)
    need_row_mask = (n_par * inner * tile_rows) != rows

    def in_map(p, i):
        # Clamp fully-out-of-range blocks (odd n_blocks) onto the last real block; the
        # in-kernel edge mask zeroes their contribution (need_row_mask is guaranteed
        # True whenever the grid over-covers the rows).
        b = jnp.minimum(p * inner + i, n_blocks - 1)
        return (b, 0)

    out_map = lambda p, i: (p, 0)

    kernel = functools.partial(_masked_sq_kernel,
                               total_rows=rows, need_row_mask=need_row_mask)

    sq_p, cnt_p = pl.pallas_call(
        kernel,
        out_shape=(jax.ShapeDtypeStruct((n_par * 8, cols), jnp.float32),
                   jax.ShapeDtypeStruct((n_par * 8, cols), jnp.float32)),
        grid_spec=pltpu.PrefetchScalarGridSpec(
            num_scalar_prefetch=0,
            grid=(n_par, inner),
            in_specs=[
                pl.BlockSpec((tile_rows, cols), in_map),   # y_hat (native dtype)
                pl.BlockSpec((tile_rows, cols), in_map),   # y     (native dtype)
                pl.BlockSpec((tile_rows, cols), in_map),   # mask  (bool/int8/float as given)
            ],
            # TODO(synk): sweep pipeline_mode=pl.Buffered(3) on the input specs on v7x.
            out_specs=(
                pl.BlockSpec((8, cols), out_map),          # per-(col, sublane) sq sums
                pl.BlockSpec((8, cols), out_map),          # per-(col, sublane) mask counts
            ),
        ),
        compiler_params=pltpu.CompilerParams(
            dimension_semantics=("parallel", "arbitrary"),
            vmem_limit_bytes=vmem_limit,
        ),
    )(yh2, yt2, mk2)

    # Epoch-dependent per-feature weights applied to the tiny per-column partials
    # (kernel stays epoch-agnostic -> one compiled kernel reused across epochs).
    feat = jnp.arange(f, dtype=jnp.float32)
    w = 1.0 + epoch_ratio * (feat / float(max(f - 1, 1)))   # (F,)
    w_cols = jnp.tile(w, k)                                  # (cols,)
    num = jnp.sum(sq_p * w_cols[None, :])
    den = jnp.sum(cnt_p)
    return num / jnp.maximum(den, 1.0)


_evolutive_masked_mse_jit = jax.jit(_evolutive_masked_mse_impl, static_argnums=(4,))


def evolutive_masked_mse(y_hat, y, mask, epoch_ratio, *, max_tile_rows=32768):
    """Forward pass of the (concretized) EvolutiveLossFunction."""
    return _evolutive_masked_mse_jit(y_hat, y, mask, epoch_ratio, max_tile_rows)


class EvolutiveLossFunctionJAX:
    """Mirror of the PyTorch module's epoch-management API."""

    def __init__(self):
        self.epoch = 0

    def forward(self, y_hat, y, mask):
        ratio = jnp.asarray(self.epoch / (self.epoch + 1.0), dtype=jnp.float32)
        return evolutive_masked_mse(y_hat, y, mask, ratio)

    __call__ = forward

    def on_epoch_change(self) -> None:
        pass  # weight schedule derives from self.epoch; passed as a traced scalar

    def step(self) -> None:
        self.epoch += 1
        self.on_epoch_change()

    def set_epoch(self, epoch: int) -> None:
        self.epoch = epoch
        self.on_epoch_change()


if __name__ == "__main__":
    key = jax.random.PRNGKey(0)
    k1, k2, k3, k4, k5, k6, k7, k8, k9 = jax.random.split(key, 9)

    # --- test 1: lane-packed (F=32 -> k=4, cols=128), f32, single block, epoch=3 ---
    N, F = 128, 32
    y_hat = jax.random.normal(k1, (N, F), dtype=jnp.float32)
    y = jax.random.normal(k2, (N, F), dtype=jnp.float32)
    mask = jax.random.bernoulli(k3, p=0.8, shape=(N, F))

    loss_fn = EvolutiveLossFunctionJAX()
    loss_fn.set_epoch(3)
    loss = loss_fn(y_hat, y, mask)
    jax.block_until_ready(loss)

    feat = jnp.arange(F, dtype=jnp.float32)
    w = 1.0 + (3.0 / 4.0) * (feat / (F - 1))
    m = mask.astype(jnp.float32)
    ref = jnp.sum(w[None, :] * m * (y_hat - y) ** 2) / jnp.maximum(jnp.sum(m), 1.0)
    assert jnp.allclose(loss, ref, rtol=1e-5, atol=1e-5), (loss, ref)

    # --- test 2: ragged rows, multi-step grid, edge masking, bf16, epoch=0 ---
    N2, F2 = 1128, 32
    y_hat2 = jax.random.normal(k4, (N2, F2), dtype=jnp.float32).astype(jnp.bfloat16)
    y2 = jax.random.normal(k5, (N2, F2), dtype=jnp.float32).astype(jnp.bfloat16)
    mask2 = jax.random.bernoulli(k6, p=0.7, shape=(N2, F2))

    ratio0 = jnp.asarray(0.0, dtype=jnp.float32)
    loss2 = evolutive_masked_mse(y_hat2, y2, mask2, ratio0, max_tile_rows=32)
    jax.block_until_ready(loss2)

    m2 = mask2.astype(jnp.float32)
    d2 = y_hat2.astype(jnp.float32) - y2.astype(jnp.float32)
    ref2 = jnp.sum(m2 * d2 * d2) / jnp.maximum(jnp.sum(m2), 1.0)
    assert jnp.allclose(loss2, ref2, rtol=2e-3, atol=2e-3), (loss2, ref2)

    # --- test 3: N not divisible by the pack factor (row-pad fallback), epoch=5 ---
    N3, F3 = 101, 32
    y_hat3 = jax.random.normal(k7, (N3, F3), dtype=jnp.float32)
    y3 = jax.random.normal(k8, (N3, F3), dtype=jnp.float32)
    mask3 = jax.random.bernoulli(k9, p=0.6, shape=(N3, F3))

    loss_fn.set_epoch(5)
    loss3 = loss_fn(y_hat3, y3, mask3)
    jax.block_until_ready(loss3)

    feat3 = jnp.arange(F3, dtype=jnp.float32)
    w3 = 1.0 + (5.0 / 6.0) * (feat3 / (F3 - 1))
    m3 = mask3.astype(jnp.float32)
    ref3 = jnp.sum(w3[None, :] * m3 * (y_hat3 - y3) ** 2) / jnp.maximum(jnp.sum(m3), 1.0)
    assert jnp.allclose(loss3, ref3, rtol=1e-5, atol=1e-5), (loss3, ref3)

    print("KERNEL_OK")
</pallas_src>

<mosaic_0001>
module attributes {stable_mosaic.version = 11 : i64} {
  func.func @_masked_sq_kernel(%arg0: i32, %arg1: i32, %arg2: memref<32x128xf32, #tpu.memory_space<vmem>>, %arg3: memref<32x128xf32, #tpu.memory_space<vmem>>, %arg4: memref<32x128xi32, #tpu.memory_space<vmem>>, %arg5: memref<8x128xf32, #tpu.memory_space<vmem>>, %arg6: memref<8x128xf32, #tpu.memory_space<vmem>>) attributes {dimension_semantics = [#tpu.dimension_semantics<parallel>, #tpu.dimension_semantics<arbitrary>], iteration_bounds = array<i64: 1, 1>, scalar_prefetch = 0 : i64, scratch_operands = 0 : i64, tpu.core_type = #tpu.core_type<tc>, window_params = [{transform_indices = @transform_0, window_bounds = array<i64: 32, 128>}, {transform_indices = @transform_1, window_bounds = array<i64: 32, 128>}, {transform_indices = @transform_2, window_bounds = array<i64: 32, 128>}, {transform_indices = @transform_3, window_bounds = array<i64: 8, 128>}, {transform_indices = @transform_4, window_bounds = array<i64: 8, 128>}]} {
    %c0_i32 = arith.constant 0 : i32
    %0 = arith.cmpi eq, %arg1, %c0_i32 : i32
    %1 = arith.extui %0 : i1 to i32
    %c0_i32_0 = arith.constant 0 : i32
    %2 = arith.cmpi ne, %1, %c0_i32_0 : i32
    scf.if %2 {
      %cst_18 = arith.constant 0.000000e+00 : f32
      %23 = vector.broadcast %cst_18 : f32 to vector<8x128xf32>
      %c0_19 = arith.constant 0 : index
      %c0_20 = arith.constant 0 : index
      %24 = vector.load %arg5[%c0_19, %c0_20] : memref<8x128xf32, #tpu.memory_space<vmem>>, vector<8x128xf32>
      tpu.vector_store %arg5[%c0_19, %c0_20], %23 {strides = array<i32>} : memref<8x128xf32, #tpu.memory_space<vmem>>, vector<8x128xf32>,
      %cst_21 = arith.constant 0.000000e+00 : f32
      %25 = vector.broadcast %cst_21 : f32 to vector<8x128xf32>
      %c0_22 = arith.constant 0 : index
      %c0_23 = arith.constant 0 : index
      %26 = vector.load %arg6[%c0_22, %c0_23] : memref<8x128xf32, #tpu.memory_space<vmem>>, vector<8x128xf32>
      tpu.vector_store %arg6[%c0_22, %c0_23], %25 {strides = array<i32>} : memref<8x128xf32, #tpu.memory_space<vmem>>, vector<8x128xf32>,
    } else {
    }
    %c0 = arith.constant 0 : index
    %c0_1 = arith.constant 0 : index
    %3 = vector.load %arg2[%c0, %c0_1] : memref<32x128xf32, #tpu.memory_space<vmem>>, vector<32x128xf32>
    %c0_2 = arith.constant 0 : index
    %c0_3 = arith.constant 0 : index
    %4 = vector.load %arg3[%c0_2, %c0_3] : memref<32x128xf32, #tpu.memory_space<vmem>>, vector<32x128xf32>
    %c0_4 = arith.constant 0 : index
    %c0_5 = arith.constant 0 : index
    %5 = vector.load %arg4[%c0_4, %c0_5] : memref<32x128xi32, #tpu.memory_space<vmem>>, vector<32x128xi32>
    %cst = arith.constant dense<0> : vector<32x128xi32>
    %6 = arith.cmpi ne, %5, %cst : vector<32x128xi32>
    %cst_6 = arith.constant 1.000000e+00 : f32
    %cst_7 = arith.constant 0.000000e+00 : f32
    %7 = vector.broadcast %cst_6 : f32 to vector<32x128xf32>
    %8 = vector.broadcast %cst_7 : f32 to vector<32x128xf32>
    %9 = arith.select %6, %7, %8 : vector<32x128xi1>, vector<32x128xf32>
    %10 = arith.subf %3, %4 : vector<32x128xf32>
    %11 = arith.mulf %9, %10 : vector<32x128xf32>
    %12 = arith.mulf %11, %10 : vector<32x128xf32>
    %c0_8 = arith.constant 0 : index
    %c0_9 = arith.constant 0 : index
    %13 = vector.load %arg5[%c0_8, %c0_9] : memref<8x128xf32, #tpu.memory_space<vmem>>, vector<8x128xf32>
    %14 = vector.shape_cast %12 : vector<32x128xf32> to vector<4x8x128xf32>
    %cst_10 = arith.constant dense<0.000000e+00> : vector<8x128xf32>
    %15 = vector.multi_reduction <add>, %14, %cst_10 [0] : vector<4x8x128xf32> to vector<8x128xf32>
    %16 = arith.addf %13, %15 : vector<8x128xf32>
    %c0_11 = arith.constant 0 : index
    %c0_12 = arith.constant 0 : index
    %17 = vector.load %arg5[%c0_11, %c0_12] : memref<8x128xf32, #tpu.memory_space<vmem>>, vector<8x128xf32>
    tpu.vector_store %arg5[%c0_11, %c0_12], %16 {strides = array<i32>} : memref<8x128xf32, #tpu.memory_space<vmem>>, vector<8x128xf32>,
    %c0_13 = arith.constant 0 : index
    %c0_14 = arith.constant 0 : index
    %18 = vector.load %arg6[%c0_13, %c0_14] : memref<8x128xf32, #tpu.memory_space<vmem>>, vector<8x128xf32>
    %19 = vector.shape_cast %9 : vector<32x128xf32> to vector<4x8x128xf32>
    %cst_15 = arith.constant dense<0.000000e+00> : vector<8x128xf32>
    %20 = vector.multi_reduction <add>, %19, %cst_15 [0] : vector<4x8x128xf32> to vector<8x128xf32>
    %21 = arith.addf %18, %20 : vector<8x128xf32>
    %c0_16 = arith.constant 0 : index
    %c0_17 = arith.constant 0 : index
    %22 = vector.load %arg6[%c0_16, %c0_17] : memref<8x128xf32, #tpu.memory_space<vmem>>, vector<8x128xf32>
    tpu.vector_store %arg6[%c0_16, %c0_17], %21 {strides = array<i32>} : memref<8x128xf32, #tpu.memory_space<vmem>>, vector<8x128xf32>,
    return
  }
  func.func @transform_0(%arg0: i32, %arg1: i32) -> (i32, i32) {
    %c1_i32 = arith.constant 1 : i32
    %0 = arith.muli %arg0, %c1_i32 : i32
    %1 = arith.addi %0, %arg1 : i32
    %c0_i32 = arith.constant 0 : i32
    %2 = arith.minsi %1, %c0_i32 : i32
    %c0_i32_0 = arith.constant 0 : i32
    %c0_i32_1 = arith.constant 0 : i32
    return %2, %c0_i32_0 : i32, i32
  }
  func.func @transform_1(%arg0: i32, %arg1: i32) -> (i32, i32) {
    %c1_i32 = arith.constant 1 : i32
    %0 = arith.muli %arg0, %c1_i32 : i32
    %1 = arith.addi %0, %arg1 : i32
    %c0_i32 = arith.constant 0 : i32
    %2 = arith.minsi %1, %c0_i32 : i32
    %c0_i32_0 = arith.constant 0 : i32
    %c0_i32_1 = arith.constant 0 : i32
    return %2, %c0_i32_0 : i32, i32
  }
  func.func @transform_2(%arg0: i32, %arg1: i32) -> (i32, i32) {
    %c1_i32 = arith.constant 1 : i32
    %0 = arith.muli %arg0, %c1_i32 : i32
    %1 = arith.addi %0, %arg1 : i32
    %c0_i32 = arith.constant 0 : i32
    %2 = arith.minsi %1, %c0_i32 : i32
    %c0_i32_0 = arith.constant 0 : i32
    %c0_i32_1 = arith.constant 0 : i32
    return %2, %c0_i32_0 : i32, i32
  }
  func.func @transform_3(%arg0: i32, %arg1: i32) -> (i32, i32) {
    %c0_i32 = arith.constant 0 : i32
    %c0_i32_0 = arith.constant 0 : i32
    return %arg0, %c0_i32 : i32, i32
  }
  func.func @transform_4(%arg0: i32, %arg1: i32) -> (i32, i32) {
    %c0_i32 = arith.constant 0 : i32
    %c0_i32_0 = arith.constant 0 : i32
    return %arg0, %c0_i32 : i32, i32
  }
}

</mosaic_0001>

<bundles_post_ra>
// kernel: mul.9
= control target key start
LH: loop header
LB: loop body
LE: loop exit
PB: predicated region body
PF: predicated region fallthrough
CT: control target
= control target key end

     0   :  { %s37_s8 = smov 32   ;;  %s38_s9 = smov 64   ;;  %vm7_vm0 = vcmask 261120   ;;  %vm13_vm1 = vcmask 1048320   ;;  %vm19_vm2 = vcmask 785920   ;;  %vm25_vm3 = vcmask 523520   ;;  %s55_s0 = inlined_call_operand.vmem [shape: f32[4,32], index: 0, kind: input, shape index: {}]   ;;  %s56_s1 = inlined_call_operand.vmem [shape: f32[128], index: 1, kind: output, shape index: {}]  }
   0x1   :  { %v4_v0 = vld [vmem:[%s55_s0] sm:$0xf]  ;;  %s36_s0 = smov 96  }
   0x2   :  { %5 = vst [vmem:[#allocation1] sm:$0xf] %v4_v0 }
   0x9   :  { %v10_v1 = vld [vmem:[#allocation1 + $0x3] sm:$0x1]   ;;  %v22_v2 = vld [vmem:[#allocation1 + $0x1] sm:$0x1]   ;;  %v16_v3 = vld [vmem:[#allocation1 + $0x2] sm:$0x1]  }
   0xa   :  { %11 = vrot.lane.b32.xlu0 %v10_v1, %s36_s0  ;;  %23 = vrot.lane.b32.xlu1 %v22_v2, %s37_s8  ;;  %v6_v4 = vld [vmem:[#allocation1] sm:$0x1]  }
   0xb   :  { %8 = vst.msk [vmem:[#allocation0] sm:$0x1] %vm7_vm0, %v6_v4  }
  0x12   :  { %17 = vrot.lane.b32.xlu0 %v16_v3, %s38_s9 }
  0x7c   :  { %v12_v5 = vpop.permute.xlu0 %11   ;;  %v24_v6 = vpop.permute.xlu1 %23  }
  0x7d   :  { %14 = vst.msk [vmem:[#allocation0] sm:$0x1] %vm13_vm1, %v12_v5  }
  0x84   :  { %v18_v7 = vpop.permute.xlu0 %17  }
  0x85   :  { %20 = vst.msk [vmem:[#allocation0] sm:$0x1] %vm19_vm2, %v18_v7  }
  0x86   :  { %26 = vst.msk [vmem:[#allocation0] sm:$0x1] %vm25_vm3, %v24_v6  }
  0x8d   :  { %v29_v8 = vld [vmem:[#allocation0] sm:$0x1] }
  0x8e   :  { %32 = vst [vmem:[%s56_s1] sm:$0x1] %v29_v8 }

// kernel: tile.8
= control target key start
LH: loop header
LB: loop body
LE: loop exit
PB: predicated region body
PF: predicated region fallthrough
CT: control target
= control target key end

     0   :  { %s22_s0 = inlined_call_operand.vmem [shape: f32[32], index: 0, kind: input, shape index: {}]   ;;  %s23_s1 = inlined_call_operand.vmem [shape: f32[4,32], index: 1, kind: output, shape index: {}]  }
   0x1   :  { %v4_v0 = vld [vmem:[%s22_s0] ss:$0 sm:$0xff] }
   0x2   :  { %5 = vst [vmem:[%s23_s1] sm:$0xf] %v4_v0 }

// kernel: _evolutive_masked_mse_impl.1
= control target key start
LH: loop header
LB: loop body
LE: loop exit
PB: predicated region body
PF: predicated region fallthrough
CT: control target
= control target key end

     0   :  { %v189_v16 = vmov 0.0   ;;  %s257_s0 = inlined_call_operand.vmem [shape: f32[32,128], index: 0, kind: input, shape index: {}]   ;;  %s258_s1 = inlined_call_operand.vmem [shape: f32[32,128], index: 1, kind: input, shape index: {}]   ;;  %s259_s2 = inlined_call_operand.vmem [shape: s32[32,128], index: 2, kind: input, shape index: {}]   ;;  %s260_s4 = inlined_call_operand.vmem [shape: f32[8,128], index: 4, kind: output, shape index: {1}]   ;;  %s261_s3 = inlined_call_operand.vmem [shape: f32[8,128], index: 3, kind: output, shape index: {0}]  }
   0x1   :  { %v118_v0 = vld [vmem:[%s257_s0] sm:$0xff]  ;;  %v119_v1 = vld [vmem:[%s257_s0 + $0x8] sm:$0xff]  ;;  %v120_v2 = vld [vmem:[%s257_s0 + $0x10] sm:$0xff] }
   0x2   :  { %v121_v3 = vld [vmem:[%s257_s0 + $0x18] sm:$0xff]  ;;  %v122_v4 = vld [vmem:[%s258_s1] sm:$0xff]  ;;  %v123_v5 = vld [vmem:[%s258_s1 + $0x8] sm:$0xff] }
   0x3   :  { %v124_v6 = vld [vmem:[%s258_s1 + $0x10] sm:$0xff]  ;;  %v125_v7 = vld [vmem:[%s258_s1 + $0x18] sm:$0xff]  ;;  %v126_v8 = vld [vmem:[%s259_s2] sm:$0xff]  ;;  %v138_v9 = vsub.f32 %v118_v0, %v122_v4  ;;  %v139_v10 = vsub.f32 %v119_v1, %v123_v5 }
   0x4   :  { %v127_v11 = vld [vmem:[%s259_s2 + $0x8] sm:$0xff]  ;;  %v128_v12 = vld [vmem:[%s259_s2 + $0x10] sm:$0xff]  ;;  %v129_v13 = vld [vmem:[%s259_s2 + $0x18] sm:$0xff]  ;;  %vm130_vm0 = vcmp.ne.s32.totalorder %v126_v8, 0  ;;  %v140_v14 = vsub.f32 %v120_v2, %v124_v6  ;;  %v141_v15 = vsub.f32 %v121_v3, %v125_v7 }
   0x5   :  { %vm131_vm1 = vcmp.ne.s32.totalorder %v127_v11, 0  ;;  %vm132_vm2 = vcmp.ne.s32.totalorder %v128_v12, 0  ;;  %vm133_vm3 = vcmp.ne.s32.totalorder %v129_v13, 0  ;;  %v134_v17 = vsel %vm130_vm0, 1.0, %v189_v16 }
   0x6   :  { %v135_v18 = vsel %vm131_vm1, 1.0, %v189_v16  ;;  %v136_v19 = vsel %vm132_vm2, 1.0, %v189_v16  ;;  %v137_v20 = vsel %vm133_vm3, 1.0, %v189_v16  ;;  %v142_v21 = vmul.f32 %v138_v9, %v134_v17 }
   0x7   :  { %v143_v22 = vmul.f32 %v139_v10, %v135_v18  ;;  %v144_v23 = vmul.f32 %v140_v14, %v136_v19  ;;  %v145_v24 = vmul.f32 %v141_v15, %v137_v20  ;;  %v157_v25 = vadd.f32 %v135_v18, %v134_v17 }
   0x8   :  { %v146_v26 = vmul.f32 %v142_v21, %v138_v9 }
   0x9   :  { %v147_v27 = vmul.f32 %v143_v22, %v139_v10  ;;  %v148_v28 = vmul.f32 %v144_v23, %v140_v14  ;;  %v158_v29 = vadd.f32 %v157_v25, %v136_v19  ;;  %v149_v30 = vmul.f32 %v145_v24, %v141_v15 }
   0xb   :  { %v151_v31 = vadd.f32 %v147_v27, %v146_v26  ;;  %v159_v32 = vadd.f32 %v158_v29, %v137_v20 }
   0xd   :  { %v152_v33 = vadd.f32 %v151_v31, %v148_v28  ;;  %161 = vst [vmem:[%s260_s4] sm:$0xff] %v159_v32 }
   0xf   :  { %v153_v34 = vadd.f32 %v152_v33, %v149_v30 }
  0x11   :  { %155 = vst [vmem:[%s261_s3] sm:$0xff] %v153_v34 }

</bundles_post_ra>
